<compile_context>
chip_gen: v6e
topology: v6e:2x2x1
jax: 0.10.0
libtpu: 0.0.40
codegen_flags: <defaults>
</compile_context>

<pallas_src>
import functools

import jax
import jax.numpy as jnp
from jax.experimental import pallas as pl
from jax.experimental.pallas import tpu as pltpu


def _round_up(x, m):
    return ((x + m - 1) // m) * m


def _kv_proj_kernel(x_ref, w_ref, bv_ref, k_ref, v_ref, *, d, compute_dtype):
    """Fused K/V projection for one tile of rows.

    x_ref : (tm, D)   activations in their native dtype (e.g. f32); cast in-kernel
    w_ref : (D, 2D)   [Wk^T | Wv^T] in compute dtype (bf16), resident (Buffered(1))
    bv_ref: (1, D)    value bias, f32, resident (Buffered(1))
    k_ref : (tm, D)   key output
    v_ref : (tm, D)   value output

    INVARIANT: this kernel is strictly row-wise.  With a ragged last tile the
    out-of-range rows of x_ref hold stale VMEM contents; they are computed but
    masked away by Pallas on store.  Do not add any cross-row reduction here
    without re-introducing explicit padding.
    """
    # Cast in-kernel: the VPU cast hides under the MXU pass and avoids a separate
    # wrapper-side cast that would double x HBM traffic.
    x = x_ref[...].astype(compute_dtype)
    kv = jnp.dot(x, w_ref[...], preferred_element_type=jnp.float32)
    k_ref[...] = kv[:, :d].astype(k_ref.dtype)                   # K: no bias
    v_ref[...] = (kv[:, d:] + bv_ref[...]).astype(v_ref.dtype)   # V: f32 bias on V half only


@functools.partial(jax.jit, static_argnames=("block_m", "compute_dtype", "out_dtype"))
def _kv_proj(xa, w_fused_t, b_v, *, block_m=512, compute_dtype=jnp.bfloat16,
             out_dtype=None):
    """k = xa @ Wk^T ; v = xa @ Wv^T + bv   (PyTorch nn.Linear convention), fused."""
    B, T, D = xa.shape
    M = B * T
    out_dt = jnp.dtype(xa.dtype) if out_dtype is None else jnp.dtype(out_dtype)

    in_bytes = jnp.dtype(xa.dtype).itemsize
    comp_bytes = jnp.dtype(compute_dtype).itemsize
    out_bytes = out_dt.itemsize

    # No cast, no pad in the wrapper: collapse leading dims only (free).
    x2d = xa.reshape(M, D)

    # Row tile: block_m when M is large enough (=> >= 2 grid steps, keeps both v7x
    # TensorCores busy under "parallel"); otherwise one sublane-aligned tile.
    tm = block_m if M > block_m else _round_up(M, 8)
    grid = (pl.cdiv(M, tm),)

    # Working-set estimate: resident weight + bias, double-buffered x (native dtype),
    # double-buffered k/v outputs, plus (tm, 2D) f32 intermediate headroom.
    vmem_need = (2 * D * (2 * D)              # fused bf16 weight, single buffer
                 + 4 * D                       # value bias (f32)
                 + 2 * tm * D * in_bytes       # x, double buffer
                 + 2 * 2 * tm * D * out_bytes  # k, v, double buffers
                 + tm * 2 * D * 4)             # f32 kv intermediate headroom
    vmem_limit = int(min(max(int(vmem_need * 1.25), 32 * 1024 * 1024),
                         64 * 1024 * 1024))

    cost = pl.CostEstimate(
        flops=2 * M * D * (2 * D),
        transcendentals=0,
        bytes_accessed=(M * D * in_bytes            # x in (native dtype)
                        + 2 * D * D * comp_bytes    # fused weight
                        + D * 4                     # value bias
                        + 2 * M * D * out_bytes),   # k, v out
    )

    k2d, v2d = pl.pallas_call(
        functools.partial(_kv_proj_kernel, d=D, compute_dtype=compute_dtype),
        out_shape=(
            jax.ShapeDtypeStruct((M, D), out_dt),
            jax.ShapeDtypeStruct((M, D), out_dt),
        ),
        grid_spec=pltpu.PrefetchScalarGridSpec(
            num_scalar_prefetch=0,
            grid=grid,
            in_specs=[
                # Activation tile: pipelined (double-buffered) along the row grid.
                pl.BlockSpec((tm, D), lambda i: (i, 0)),
                # Resident fused weight / value bias: constant index_map, single buffer.
                pl.BlockSpec((D, 2 * D), lambda i: (0, 0),
                             pipeline_mode=pl.Buffered(1)),
                pl.BlockSpec((1, D), lambda i: (0, 0),
                             pipeline_mode=pl.Buffered(1)),
            ],
            out_specs=[
                pl.BlockSpec((tm, D), lambda i: (i, 0)),
                pl.BlockSpec((tm, D), lambda i: (i, 0)),
            ],
        ),
        compiler_params=pltpu.CompilerParams(
            dimension_semantics=("parallel",),
            vmem_limit_bytes=vmem_limit,
        ),
        cost_estimate=cost,
    )(x2d, w_fused_t, b_v)

    return k2d.reshape(B, T, D), v2d.reshape(B, T, D)


class CrossAttnKVGetter:
    """JAX/Pallas port of the scripted cross-attention kv-cache getter."""

    def __init__(self, n_state, key=None, compute_dtype=jnp.bfloat16,
                 block_m=512, out_dtype=None):
        if key is None:
            key = jax.random.PRNGKey(0)
        k1, k2, k3 = jax.random.split(key, 3)
        scale = 1.0 / jnp.sqrt(n_state)
        # PyTorch nn.Linear weight layout: (out_features, in_features).
        self.wk = (jax.random.uniform(k1, (n_state, n_state), jnp.float32,
                                      minval=-1.0, maxval=1.0) * scale)
        self.wv = (jax.random.uniform(k2, (n_state, n_state), jnp.float32,
                                      minval=-1.0, maxval=1.0) * scale)
        self.bv = (jax.random.uniform(k3, (n_state,), jnp.float32,
                                      minval=-1.0, maxval=1.0) * scale)

        # One-time weight prep (hoisted out of the per-call path):
        #   fused, transposed weight  [Wk^T | Wv^T] : (D, 2D), compute dtype (bf16)
        #   value bias                               : (1, D), f32 (no zero K half)
        self.w_fused_t = jnp.concatenate([self.wk.T, self.wv.T],
                                         axis=1).astype(compute_dtype)
        self.b_v = self.bv.reshape(1, n_state).astype(jnp.float32)

        self.compute_dtype = compute_dtype
        self.block_m = block_m
        self.out_dtype = out_dtype   # None -> match xa.dtype (PyTorch semantics)

    def __call__(self, xa, kv_cache=None):
        # The cache-hit condition is shape-based (static), so it stays Python-side,
        # mirroring the torch.jit.script branch on kv_cache[0].shape[1] == 0.
        if kv_cache is None or kv_cache[0].shape[1] == 0:
            k, v = _kv_proj(xa, self.w_fused_t, self.b_v,
                            block_m=self.block_m,
                            compute_dtype=self.compute_dtype,
                            out_dtype=self.out_dtype)
        else:
            k, v = kv_cache
        return (k, v)


if __name__ == "__main__":
    B, T, D = 2, 8, 32  # batch, audio-encoder seq length, n_state (small test shapes)
    root = jax.random.PRNGKey(0)
    kx, kp = jax.random.split(root)
    xa = jax.random.normal(kx, (B, T, D), dtype=jnp.float32)

    getter = CrossAttnKVGetter(D, key=kp)

    # Branch 1: empty cache -> compute K/V with the Pallas kernel.
    empty_cache = (jnp.zeros((B, 0, D), jnp.float32), jnp.zeros((B, 0, D), jnp.float32))
    k, v = getter(xa, empty_cache)
    jax.block_until_ready((k, v))

    # Reference check in plain JAX (f32, PyTorch nn.Linear semantics).
    # bf16 MXU inputs with f32 accumulation -> bf16-appropriate tolerances.
    k_ref = jnp.einsum("btd,od->bto", xa, getter.wk)
    v_ref = jnp.einsum("btd,od->bto", xa, getter.wv) + getter.bv
    assert jnp.allclose(k, k_ref, atol=5e-2, rtol=5e-2), "key projection mismatch"
    assert jnp.allclose(v, v_ref, atol=5e-2, rtol=5e-2), "value projection mismatch"

    # Branch 2: populated cache -> passthrough (no kernel call).
    k2, v2 = getter(xa, (k, v))
    jax.block_until_ready((k2, v2))
    assert k2 is k and v2 is v

    # Ragged row count (M not a multiple of the tile): masked-edge-store path.
    xa_rag = jax.random.normal(kx, (3, 5, D), dtype=jnp.float32)
    kr, vr = getter(xa_rag, None)
    jax.block_until_ready((kr, vr))
    kr_ref = jnp.einsum("btd,od->bto", xa_rag, getter.wk)
    vr_ref = jnp.einsum("btd,od->bto", xa_rag, getter.wv) + getter.bv
    assert jnp.allclose(kr, kr_ref, atol=5e-2, rtol=5e-2)
    assert jnp.allclose(vr, vr_ref, atol=5e-2, rtol=5e-2)

    # Multi-step grid (M > block_m) with a ragged last tile, exercising the
    # "parallel" row grid and the masked final store together.
    getter_small = CrossAttnKVGetter(D, key=kp, block_m=8)
    xa_multi = jax.random.normal(kx, (3, 5, D), dtype=jnp.float32)  # M=15, tiles of 8
    km, vm = getter_small(xa_multi, None)
    jax.block_until_ready((km, vm))
    km_ref = jnp.einsum("btd,od->bto", xa_multi, getter_small.wk)
    vm_ref = jnp.einsum("btd,od->bto", xa_multi, getter_small.wv) + getter_small.bv
    assert jnp.allclose(km, km_ref, atol=5e-2, rtol=5e-2)
    assert jnp.allclose(vm, vm_ref, atol=5e-2, rtol=5e-2)

    print("KERNEL_OK")
</pallas_src>

<mosaic_0001>
module attributes {stable_mosaic.version = 11 : i64} {
  func.func @_kv_proj_kernel(%arg0: i32, %arg1: memref<16x32xf32, #tpu.memory_space<vmem>>, %arg2: memref<32x64xbf16, #tpu.memory_space<vmem>>, %arg3: memref<1x32xf32, #tpu.memory_space<vmem>>, %arg4: memref<16x32xf32, #tpu.memory_space<vmem>>, %arg5: memref<16x32xf32, #tpu.memory_space<vmem>>) attributes {dimension_semantics = [#tpu.dimension_semantics<parallel>], iteration_bounds = array<i64: 1>, scalar_prefetch = 0 : i64, scratch_operands = 0 : i64, tpu.core_type = #tpu.core_type<tc>, window_params = [{transform_indices = @transform_0, window_bounds = array<i64: 16, 32>}, {pipeline_mode = #tpu.pipeline_mode<synchronous>, transform_indices = @transform_1, window_bounds = array<i64: 32, 64>}, {pipeline_mode = #tpu.pipeline_mode<synchronous>, transform_indices = @transform_2, window_bounds = array<i64: 1, 32>}, {transform_indices = @transform_3, window_bounds = array<i64: 16, 32>}, {transform_indices = @transform_4, window_bounds = array<i64: 16, 32>}]} {
    %c0 = arith.constant 0 : index
    %c0_0 = arith.constant 0 : index
    %0 = vector.load %arg1[%c0, %c0_0] : memref<16x32xf32, #tpu.memory_space<vmem>>, vector<16x32xf32>
    %1 = arith.truncf %0 : vector<16x32xf32> to vector<16x32xbf16>
    %c0_1 = arith.constant 0 : index
    %c0_2 = arith.constant 0 : index
    %2 = vector.load %arg2[%c0_1, %c0_2] : memref<32x64xbf16, #tpu.memory_space<vmem>>, vector<32x64xbf16>
    %cst = arith.constant dense<0.000000e+00> : vector<16x64xf32>
    %3 = tpu.matmul %1, %2, %cst {dimension_numbers = #tpu.dot_dimension_numbers<[1], [0], [0], [1], [0, 0, 1, 1], [], []>} : vector<16x32xbf16>, vector<32x64xbf16>, vector<16x64xf32> -> vector<16x64xf32>
    %4 = vector.extract_strided_slice %3 {offsets = [0, 0], sizes = [16, 32], strides = [1, 1]} : vector<16x64xf32> to vector<16x32xf32>
    %c0_3 = arith.constant 0 : index
    %c0_4 = arith.constant 0 : index
    %5 = vector.load %arg4[%c0_3, %c0_4] : memref<16x32xf32, #tpu.memory_space<vmem>>, vector<16x32xf32>
    tpu.vector_store %arg4[%c0_3, %c0_4], %4 {strides = array<i32>} : memref<16x32xf32, #tpu.memory_space<vmem>>, vector<16x32xf32>,
    %6 = vector.extract_strided_slice %3 {offsets = [0, 32], sizes = [16, 32], strides = [1, 1]} : vector<16x64xf32> to vector<16x32xf32>
    %c0_5 = arith.constant 0 : index
    %c0_6 = arith.constant 0 : index
    %7 = vector.load %arg3[%c0_5, %c0_6] : memref<1x32xf32, #tpu.memory_space<vmem>>, vector<1x32xf32>
    %8 = vector.broadcast %7 : vector<1x32xf32> to vector<16x32xf32>
    %9 = arith.addf %6, %8 : vector<16x32xf32>
    %c0_7 = arith.constant 0 : index
    %c0_8 = arith.constant 0 : index
    %10 = vector.load %arg5[%c0_7, %c0_8] : memref<16x32xf32, #tpu.memory_space<vmem>>, vector<16x32xf32>
    tpu.vector_store %arg5[%c0_7, %c0_8], %9 {strides = array<i32>} : memref<16x32xf32, #tpu.memory_space<vmem>>, vector<16x32xf32>,
    return
  }
  func.func @transform_0(%arg0: i32) -> (i32, i32) {
    %c0_i32 = arith.constant 0 : i32
    %c0_i32_0 = arith.constant 0 : i32
    return %arg0, %c0_i32 : i32, i32
  }
  func.func @transform_1(%arg0: i32) -> (i32, i32) {
    %c0_i32 = arith.constant 0 : i32
    %c0_i32_0 = arith.constant 0 : i32
    %c0_i32_1 = arith.constant 0 : i32
    return %c0_i32, %c0_i32_0 : i32, i32
  }
  func.func @transform_2(%arg0: i32) -> (i32, i32) {
    %c0_i32 = arith.constant 0 : i32
    %c0_i32_0 = arith.constant 0 : i32
    %c0_i32_1 = arith.constant 0 : i32
    return %c0_i32, %c0_i32_0 : i32, i32
  }
  func.func @transform_3(%arg0: i32) -> (i32, i32) {
    %c0_i32 = arith.constant 0 : i32
    %c0_i32_0 = arith.constant 0 : i32
    return %arg0, %c0_i32 : i32, i32
  }
  func.func @transform_4(%arg0: i32) -> (i32, i32) {
    %c0_i32 = arith.constant 0 : i32
    %c0_i32_0 = arith.constant 0 : i32
    return %arg0, %c0_i32 : i32, i32
  }
}

</mosaic_0001>

<bundles_post_ra>
// kernel: _kv_proj.1
= control target key start
LH: loop header
LB: loop body
LE: loop exit
PB: predicated region body
PF: predicated region fallthrough
CT: control target
= control target key end

     0   :  { %10 = vsyncpa [#allocation3], 0  ;;  %s351_s0 = inlined_call_operand.hbm [shape: f32[16,32], index: 0, kind: input, shape index: {}]   ;;  %s352_s1 = inlined_call_operand.hbm [shape: bf16[32,64], index: 1, kind: input, shape index: {}]   ;;  %s353_s2 = inlined_call_operand.vmem [shape: f32[1,32], index: 2, kind: input, shape index: {}]   ;;  %s354_s3 = inlined_call_operand.hbm [shape: f32[16,32], index: 3, kind: output, shape index: {0}]   ;;  %s355_s4 = inlined_call_operand.hbm [shape: f32[16,32], index: 4, kind: output, shape index: {1}]  }
   0x1   :  { %11 = vsyncpa [#allocation6], 0 }
   0x2   :  { %12 = vsyncpa [#allocation4], 0 }
   0x3   :  { %13 = vsyncpa [#allocation9], 0  ;;  %s285_s15 = smov [#allocation2]  }
   0x4   :  { %s19_s16 = sshll.u32 %s285_s15, 4  ;;  %s20_s16 = int_to_ptr.vmem [resolvable:$true] %s19_s16 }
   0x5   :  { %s205_s17 = scalar_lea.vmem %s20_s16, 256  ;;  %p210_p1 = scmp.lt.s32.totalorder %s20_s16, %s20_s16 }
   0x6   :  { %p206_p0 = scmp.ne.s32.totalorder %s20_s16, %s205_s17  ;;  %p211_p2 = scmp.lt.s32.totalorder %s205_s17, %s205_s17 }
   0x8   :  { %p212_p3 = por %p211_p2, %p210_p1 }
   0xa   :  { %p213_p4 = pnand %p212_p3, %p206_p0 }
   0xc   :  { %216 = shalt.err (!%p213_p4)
}
   0xd   :  { %s286_s18 = smov 128   ;;  %s287_s19 = smov 8  }
   0xe   :  { %25 = dma.hbm_to_vmem [thread:$0]  %s351_s0, 256, %s20_s16, [#allocation3], %s286_s18, %s286_s18, %s287_s19  }
   0xf   :  { %s288_s22 = smov [#allocation5]  }
  0x10   :  { %s31_s23 = sshll.u32 %s288_s22, 4  ;;  %s32_s23 = int_to_ptr.vmem [resolvable:$true] %s31_s23 }
  0x11   :  { %s225_s24 = scalar_lea.vmem %s32_s23, 256  ;;  %p230_p6 = scmp.lt.s32.totalorder %s32_s23, %s32_s23 }
  0x12   :  { %p226_p5 = scmp.ne.s32.totalorder %s32_s23, %s225_s24  ;;  %p231_p7 = scmp.lt.s32.totalorder %s225_s24, %s225_s24 }
  0x14   :  { %p232_p8 = por %p231_p7, %p230_p6 }
  0x16   :  { %p233_p9 = pnand %p232_p8, %p226_p5 }
  0x18   :  { %236 = shalt.err (!%p233_p9)
}
  0x19   :  { %s289_s25 = smov 64   ;;  %s290_s26 = smov 4  }
  0x1a   :  { %37 = dma.hbm_to_vmem [thread:$0]  %s352_s1, 256, %s32_s23, [#allocation6], %s289_s25, %s289_s25, %s290_s26  }
  0x1b   :  { %277 = dma.done.wait [#allocation3], 256  }
  0x1c   :  { %278 = vsyncadd [#allocation3], 4294967040 }
  0x1d   :  { %279 = dma.done.wait [#allocation6], 256  }
  0x1e   :  { %280 = vsyncadd [#allocation6], 4294967040  ;;  %v291_v0 = vmov 0.0   ;;  %vm292_vm0 = vmmov 0   ;;  %v195_v1 = vld [vmem:[#allocation5 + $0x8] sm:$0xff]   ;;  %v196_v2 = vld [vmem:[#allocation5] sm:$0xff]  }
  0x1f   :  { %175 = vmatprep.subr.bf16.mxu0 %v291_v0  ;;  %179 = vmatprep.mubr.msk.bf16.mxu0 %vm292_vm0, %v291_v0  ;;  %v47_v3 = vld [vmem:[#allocation2] sm:$0xff]  ;;  %v48_v4 = vld [vmem:[#allocation2 + $0x8] sm:$0xff]  ;;  %s293_s30 = smov 32   ;;  %vm66_vm1 = vcmask 261120   ;;  %s294_s1 = smov [#allocation7]  }
  0x20   :  { %176 = vmatpush3.bf16.msra.mxu0 %v195_v1  ;;  %v171_v5 = vld [vmem:[%s353_s2] ss:$0 sm:$0xff]  ;;  %v49_v6 = vpack.c.bf16 %v48_v4, %v47_v3  ;;  %s139_s5 = sshll.u32 %s294_s1, 4  ;;  %s295_s6 = smov 96   ;;  %s140_s5 = int_to_ptr.vmem [resolvable:$true] %s139_s5 }
  0x21   :  { %177 = vmatprep.subr.bf16.mxu0 %v291_v0  ;;  %119 = vrot.lane.b32.xlu0 %v171_v5, %s293_s30  ;;  %s237_s2 = scalar_lea.vmem %s140_s5, 256  ;;  %p242_p11 = scmp.lt.s32.totalorder %s140_s5, %s140_s5 }
  0x22   :  { %p238_p10 = scmp.ne.s32.totalorder %s140_s5, %s237_s2  ;;  %p243_p12 = scmp.lt.s32.totalorder %s237_s2, %s237_s2 }
  0x24   :  { %178 = vmatpush3.bf16.msra.mxu0 %v196_v2  ;;  %p244_p13 = por %p243_p12, %p242_p11 }
  0x26   :  { %p245_p0 = pnand %p244_p13, %p238_p10 }
  0x27   :  { %180 = vmatmul.mubr.msk.bf16.vlgmr.msra.gmra.mxu0 %vm66_vm1, %v49_v6 }
  0x93   :  { %v120_v7 = vpop.permute.xlu0 %119 }
  0xe7   :  { %v104_v8 = vpop.f32.mrf.mxu0 }
  0xe8   :  { %111 = vst.msk [vmem:[#allocation7] sm:$0xff] %vm66_vm1, %v104_v8  ;;  %v122_v9 = vadd.f32 %v120_v7, %v104_v8 }
  0xe9   :  { %v181_v10 = vpop.f32.mrf.mxu0 }
  0xea   :  { %126 = vrot.lane.b32.xlu0 %v122_v9, %s295_s6 }
  0xeb   :  { %v107_v11 = vpop.f32.mrf.mxu0 }
  0xec   :  { %112 = vst.msk [vmem:[#allocation7 + $0x8] sm:$0xff] %vm66_vm1, %v107_v11  ;;  %v123_v12 = vadd.f32 %v120_v7, %v107_v11 }
  0xed   :  { %v182_v13 = vpop.f32.mrf.mxu0 }
  0xee   :  { %248 = shalt.err (!%p245_p0)
}
  0xef   :  { %145 = dma.vmem_to_hbm [thread:$0]  %s140_s5, 256, %s354_s3, [#allocation4], %s286_s18, %s286_s18, %s287_s19  }
  0xf0   :  { %128 = vrot.lane.b32.xlu1 %v123_v12, %s295_s6  ;;  %s296_s9 = smov [#allocation8]  }
  0xf1   :  { %s151_s10 = sshll.u32 %s296_s9, 4  ;;  %s152_s10 = int_to_ptr.vmem [resolvable:$true] %s151_s10 }
  0xf2   :  { %s257_s11 = scalar_lea.vmem %s152_s10, 256  ;;  %p262_p2 = scmp.lt.s32.totalorder %s152_s10, %s152_s10 }
  0xf3   :  { %p258_p1 = scmp.ne.s32.totalorder %s152_s10, %s257_s11  ;;  %p263_p3 = scmp.lt.s32.totalorder %s257_s11, %s257_s11 }
  0xf5   :  { %p264_p4 = por %p263_p3, %p262_p2 }
  0xf7   :  { %p265_p5 = pnand %p264_p4, %p258_p1 }
 0x15c   :  { %v127_v14 = vpop.permute.xlu0 %126 }
 0x15d   :  { %132 = vst.msk [vmem:[#allocation8] sm:$0xff] %vm66_vm1, %v127_v14 }
 0x162   :  { %v129_v15 = vpop.permute.xlu1 %128 }
 0x163   :  { %133 = vst.msk [vmem:[#allocation8 + $0x8] sm:$0xff] %vm66_vm1, %v129_v15 }
 0x164   :  { %268 = shalt.err (!%p265_p5)
}
 0x165   :  { %157 = dma.vmem_to_hbm [thread:$0]  %s152_s10, 256, %s355_s4, [#allocation9], %s286_s18, %s286_s18, %s287_s19  }
 0x166   :  { %281 = dma.done.wait [#allocation4], 256  }
 0x167   :  { %282 = vsyncadd [#allocation4], 4294967040 }
 0x168   :  { %283 = dma.done.wait [#allocation9], 256  }
 0x169   :  { %284 = vsyncadd [#allocation9], 4294967040 }
 0x16a   :  { %164 = vsyncpa [#allocation3], 1 }
 0x16b   :  { %165 = vsyncpa [#allocation6], 1 }
 0x16c   :  { %166 = vsyncpa [#allocation4], 1 }
 0x16d   :  { %167 = vsyncpa [#allocation9], 1 }

</bundles_post_ra>
